<compile_context>
chip_gen: v7x
topology: tpu7x:2x2x1
jax: 0.10.0
libtpu: 0.0.40
codegen_flags: <defaults>
</compile_context>

<pallas_src>
import functools

import jax
import jax.numpy as jnp
from jax.experimental import pallas as pl
from jax.experimental.pallas import tpu as pltpu


def _round_up(n, m):
    return ((n + m - 1) // m) * m


# ------------------------------ Pallas kernel -------------------------------

def moe_fused_kernel(counts_ref, slab_ref, w1_ref, b1_ref, w2_ref, b2_ref,
                     expand_ref, ew_ref, eb_ref, out_ref, *, top_k):
    """One batch tile of the fused MoE forward.

    counts : [TB, V]          per-sample token histogram / seq_len
    slab   : [V, Egp + Kxp]   [ shared emb | 0-pad | expert embs (flat) | 0-pad ]
    w1/b1  : [Egp, H], [1,H]  gate Linear 1 (rows >= E are zero)
    w2/b2  : [H, NE], [1,NE]  gate Linear 2
    expand : [NE, Kxp]        0/1 block expansion (row n -> cols n*E..(n+1)*E-1)
    ew     : [Kxp, Dpad]      expert Linear weights, flattened + lane-padded
    eb     : [NE, Dpad]       expert biases, lane-padded
    out    : [TB, Dpad]
    """
    gate_k = w1_ref.shape[0]           # Egp: static, lane-aligned split point
    mx_dt = slab_ref.dtype             # f32 here; bf16 for production v6e/v7x

    counts = counts_ref[...]
    # One MXU pass produces both the gating pooled embedding and all experts'
    # pooled embeddings (histogram matmul == mean over the sequence).
    pooled_tot = jnp.dot(counts.astype(mx_dt), slab_ref[...],
                         preferred_element_type=jnp.float32)       # [TB, Egp+Kxp]
    pooled_gate = pooled_tot[:, :gate_k]                            # [TB, Egp] (tile-aligned)
    pooled_all = pooled_tot[:, gate_k:]                             # [TB, Kxp] (tile-aligned)

    # ---- gating MLP -> softmax
    h = jnp.dot(pooled_gate, w1_ref[...], preferred_element_type=jnp.float32) + b1_ref[...]
    h = jnp.maximum(h, 0.0)
    logits = jnp.dot(h, w2_ref[...], preferred_element_type=jnp.float32) + b2_ref[...]  # [TB, NE]
    m = jnp.max(logits, axis=-1, keepdims=True)
    e = jnp.exp(logits - m)
    probs = e * pl.reciprocal(jnp.sum(e, axis=-1, keepdims=True), approx=True)

    # ---- in-kernel top-k (K small, unrolled VPU compare/select).
    # Lowest-index tie-breaking matches lax.top_k / torch.topk.  Assumes finite logits.
    tb, ne = probs.shape
    col = jax.lax.broadcasted_iota(jnp.int32, (tb, ne), 1)
    p_work = probs
    dense_w = jnp.zeros_like(probs)
    for _ in range(top_k):
        mx = jnp.max(p_work, axis=-1, keepdims=True)
        first = jnp.min(jnp.where(p_work == mx, col, ne), axis=-1, keepdims=True)
        sel = col == first
        dense_w = dense_w + jnp.where(sel, probs, 0.0)
        p_work = jnp.where(sel, -1.0, p_work)         # probs > 0, so -1 masks selected
    dense_w = dense_w * pl.reciprocal(jnp.sum(dense_w, axis=-1, keepdims=True),
                                      approx=True)    # renormalize over top-k

    # ---- experts: routing-scale the flat pooled activations, combine with ONE
    # K = Kxp (=128) MXU matmul; weighted bias via a tiny second matmul.
    scale = jnp.dot(dense_w, expand_ref[...], preferred_element_type=jnp.float32)   # [TB, Kxp]
    comb = (scale * pooled_all).astype(ew_ref.dtype)
    out = jnp.dot(comb, ew_ref[...], preferred_element_type=jnp.float32)            # [TB, Dpad]
    out = out + jnp.dot(dense_w, eb_ref[...], preferred_element_type=jnp.float32)
    out_ref[...] = out.astype(out_ref.dtype)          # sublane/lane-dense unmasked store


# --------------------------- one-time parameter prep -------------------------

def prepare_params(params, mxu_dtype=jnp.float32):
    """One-time layout prep (call OUTSIDE the jitted forward, right after init).

    Flattens / lane-pads the expert parameters and fuses the shared + expert embedding
    tables into a single 128-lane-aligned slab so nothing is re-materialised in HBM on
    every forward.  Pass mxu_dtype=jnp.bfloat16 for production on v6e/v7x (halves DMA
    bytes and doubles MXU throughput; in-kernel accumulation stays f32).
    """
    V, E = params["embedding"].shape
    NE, _, Dout = params["expert_w"].shape
    H = params["gate_w1"].shape[1]

    Egp = _round_up(E, 128)            # gate half of the slab, lane-aligned
    Kx = NE * E                        # expert contraction width
    Kxp = _round_up(Kx, 128)
    Dpad = _round_up(Dout, 128)        # lane-dense kernel output width

    eemb_flat = jnp.transpose(params["expert_emb"], (1, 0, 2)).reshape(V, Kx)
    slab = jnp.zeros((V, Egp + Kxp), jnp.float32)
    slab = slab.at[:, :E].set(params["embedding"])
    slab = slab.at[:, Egp:Egp + Kx].set(eemb_flat)

    w1 = jnp.zeros((Egp, H), jnp.float32).at[:E, :].set(params["gate_w1"])
    ew = jnp.zeros((Kxp, Dpad), jnp.float32).at[:Kx, :Dout].set(
        params["expert_w"].reshape(Kx, Dout))
    eb = jnp.zeros((NE, Dpad), jnp.float32).at[:, :Dout].set(params["expert_b"][:, 0, :])
    expand = jnp.zeros((NE, Kxp), jnp.float32).at[:, :Kx].set(
        jnp.repeat(jnp.eye(NE, dtype=jnp.float32), E, axis=1))

    return {
        "slab": slab.astype(mxu_dtype),        # [V, Egp+Kxp]
        "gate_w1": w1,                         # [Egp, H]
        "gate_b1": params["gate_b1"],          # [1, H]
        "gate_w2": params["gate_w2"],          # [H, NE]
        "gate_b2": params["gate_b2"],          # [1, NE]
        "expand": expand,                      # [NE, Kxp]
        "expert_w": ew.astype(mxu_dtype),      # [Kxp, Dpad]
        "expert_b": eb,                        # [NE, Dpad]
    }


# ------------------------------ Pallas wrapper -------------------------------

def moe_forward(prep, x, *, top_k, out_dim, mask=None):
    """x: [B, S] int32 token ids -> [B, out_dim] float32."""
    # TODO(synk): `mask` is forwarded to arbitrary injected expert nn.Modules in the
    # PyTorch spec (the gating path ignores it there too); the synthetic experts here
    # pool unmasked, so the argument is accepted but unused.
    B, S = x.shape
    V = prep["slab"].shape[0]
    Dpad = prep["expert_w"].shape[1]
    NE = prep["expand"].shape[0]
    k = min(top_k, NE)

    TB = 8                                     # sublane-multiple batch tile
    B_pad = _round_up(B, TB)
    num_tiles = B_pad // TB

    # Token histogram via scatter-add (no [B,S,V] one_hot intermediate):
    # (counts / S) @ embedding == mean over the sequence of the gathered rows.
    counts = jnp.zeros((B, V), jnp.float32)
    counts = counts.at[jnp.arange(B)[:, None], x].add(1.0)
    counts = counts * (1.0 / S)
    if B_pad != B:
        counts = jnp.pad(counts, ((0, B_pad - B), (0, 0)))

    # TODO(synk): for production V >> B*S, replace the full-slab DMA + histogram matmul
    # with scalar-prefetched token ids and per-row gather DMA (traffic ~ B*S rows), and
    # V-tile with an "arbitrary" reduction axis so blocks fit v7x's 64 MiB VMEM.

    kernel = functools.partial(moe_fused_kernel, top_k=k)
    const = lambda b: (0, 0)                   # parameter blocks: same block every step
    out_pad = pl.pallas_call(
        kernel,
        out_shape=jax.ShapeDtypeStruct((B_pad, Dpad), jnp.float32),
        grid=(num_tiles,),
        in_specs=[
            pl.BlockSpec((TB, V), lambda b: (b, 0)),        # counts (batch-tiled)
            pl.BlockSpec(prep["slab"].shape, const),        # fused embedding slab
            pl.BlockSpec(prep["gate_w1"].shape, const),
            pl.BlockSpec(prep["gate_b1"].shape, const),
            pl.BlockSpec(prep["gate_w2"].shape, const),
            pl.BlockSpec(prep["gate_b2"].shape, const),
            pl.BlockSpec(prep["expand"].shape, const),
            pl.BlockSpec(prep["expert_w"].shape, const),
            pl.BlockSpec(prep["expert_b"].shape, const),
        ],
        out_specs=pl.BlockSpec((TB, Dpad), lambda b: (b, 0)),
        compiler_params=pltpu.CompilerParams(
            dimension_semantics=("parallel",),        # shard batch tiles across v7x's 2 TCs
            vmem_limit_bytes=32 * 1024 * 1024,        # explicit; re-derive when V-tiling
        ),
    )(counts, prep["slab"], prep["gate_w1"], prep["gate_b1"],
      prep["gate_w2"], prep["gate_b2"], prep["expand"],
      prep["expert_w"], prep["expert_b"])

    return out_pad[:B, :out_dim]


# ------------------------------- Model params --------------------------------

def init_params(key, *, vocab_size, embedding_dim, num_experts, gate_hidden, expert_output_dim):
    ks = jax.random.split(key, 7)
    return {
        # MixtureOfExperts.embedding (shared, feeds the gating network)
        "embedding": 0.02 * jax.random.normal(ks[0], (vocab_size, embedding_dim), jnp.float32),
        # ExpertGating.gate = Linear(E, 256) -> ReLU -> Linear(256, NE)
        "gate_w1": 0.05 * jax.random.normal(ks[1], (embedding_dim, gate_hidden), jnp.float32),
        "gate_b1": jnp.zeros((1, gate_hidden), jnp.float32),
        "gate_w2": 0.05 * jax.random.normal(ks[2], (gate_hidden, num_experts), jnp.float32),
        "gate_b2": jnp.zeros((1, num_experts), jnp.float32),
        # Synthetic experts: Embedding(V, E) -> mean over seq -> Linear(E, Dout)
        "expert_emb": 0.02 * jax.random.normal(ks[3], (num_experts, vocab_size, embedding_dim), jnp.float32),
        "expert_w": 0.1 * jax.random.normal(ks[4], (num_experts, embedding_dim, expert_output_dim), jnp.float32),
        "expert_b": 0.01 * jax.random.normal(ks[5], (num_experts, 1, expert_output_dim), jnp.float32),
    }


# ------------------------------ Pure-JAX reference ---------------------------

def moe_forward_ref(params, x, top_k):
    """Gather+mean reference mirroring the PyTorch semantics (for correctness check)."""
    emb = jnp.take(params["embedding"], x, axis=0)                       # [B, S, E]
    pooled = jnp.mean(emb, axis=1)                                       # [B, E]
    h = jnp.maximum(pooled @ params["gate_w1"] + params["gate_b1"], 0.0)
    probs = jax.nn.softmax(h @ params["gate_w2"] + params["gate_b2"], axis=-1)
    rw, idx = jax.lax.top_k(probs, top_k)
    rw = rw / jnp.sum(rw, axis=-1, keepdims=True)
    exp_emb = jnp.take(params["expert_emb"], x, axis=1)                  # [NE, B, S, E]
    pooled_all = jnp.mean(exp_emb, axis=2)                               # [NE, B, E]
    expert_out = jnp.einsum("nbe,ned->nbd", pooled_all, params["expert_w"]) + params["expert_b"]
    sel = jnp.take_along_axis(
        jnp.transpose(expert_out, (1, 0, 2)), idx[..., None], axis=1)    # [B, K, Dout]
    return jnp.sum(rw[..., None] * sel, axis=1)


# ---------------------------------- main --------------------------------------

if __name__ == "__main__":
    B, S = 16, 8
    VOCAB = 64
    EMB = 32
    NUM_EXPERTS = 4
    TOP_K = 2
    NUM_CLASSES = 8          # expert_output_dim defaults to num_classes
    GATE_HIDDEN = 256

    key = jax.random.PRNGKey(0)
    k_param, k_x = jax.random.split(key)
    params = init_params(
        k_param,
        vocab_size=VOCAB,
        embedding_dim=EMB,
        num_experts=NUM_EXPERTS,
        gate_hidden=GATE_HIDDEN,
        expert_output_dim=NUM_CLASSES,
    )
    x = jax.random.randint(k_x, (B, S), 0, VOCAB, dtype=jnp.int32)

    # One-time layout prep (outside jit; production: mxu_dtype=jnp.bfloat16 on v6e/v7x).
    prep = prepare_params(params, mxu_dtype=jnp.float32)

    fwd = jax.jit(functools.partial(moe_forward, top_k=TOP_K, out_dim=NUM_CLASSES))
    out = jax.block_until_ready(fwd(prep, x))

    ref = jax.block_until_ready(moe_forward_ref(params, x, TOP_K))
    assert out.shape == (B, NUM_CLASSES)
    # Tolerance: kernel pools via a histogram matmul (MXU) and uses approximate EUP
    # reciprocals for the two normalizations, so rounding differs from the f32
    # gather+mean reference; any real routing/combine bug is orders of magnitude larger.
    assert jnp.allclose(out, ref, atol=1e-3, rtol=1e-2), "Pallas output mismatch vs JAX reference"

    print("KERNEL_OK")
</pallas_src>

<mosaic_0001>
module attributes {stable_mosaic.version = 11 : i64} {
  func.func private @main(%arg0: i32) attributes {dimension_semantics = [#tpu.dimension_semantics<core_parallel>], iteration_bounds = array<i64: 2>, tpu.core_type = #tpu.core_type<sc_scalar_subcore>, window_params = []} {
    return
  }
}

module attributes {stable_mosaic.version = 11 : i64} {
  func.func private @main(%arg0: i32) attributes {dimension_semantics = [#tpu.dimension_semantics<core_parallel>], iteration_bounds = array<i64: 2>, tpu.core_type = #tpu.core_type<sc_scalar_subcore>, window_params = []} {
    return
  }
}

module attributes {stable_mosaic.version = 11 : i64} {
  func.func @moe_fused_kernel(%arg0: i32, %arg1: memref<8x64xf32, #tpu.memory_space<vmem>>, %arg2: memref<64x256xf32, #tpu.memory_space<vmem>>, %arg3: memref<128x256xf32, #tpu.memory_space<vmem>>, %arg4: memref<1x256xf32, #tpu.memory_space<vmem>>, %arg5: memref<256x4xf32, #tpu.memory_space<vmem>>, %arg6: memref<1x4xf32, #tpu.memory_space<vmem>>, %arg7: memref<4x128xf32, #tpu.memory_space<vmem>>, %arg8: memref<128x128xf32, #tpu.memory_space<vmem>>, %arg9: memref<4x128xf32, #tpu.memory_space<vmem>>, %arg10: memref<8x128xf32, #tpu.memory_space<vmem>>) attributes {dimension_semantics = [#tpu.dimension_semantics<parallel>], iteration_bounds = array<i64: 2>, scalar_prefetch = 0 : i64, scratch_operands = 0 : i64, tpu.core_type = #tpu.core_type<tc>, window_params = [{transform_indices = @transform_0, window_bounds = array<i64: 8, 64>}, {pipeline_mode = #tpu.pipeline_mode<synchronous>, transform_indices = @transform_1, window_bounds = array<i64: 64, 256>}, {pipeline_mode = #tpu.pipeline_mode<synchronous>, transform_indices = @transform_2, window_bounds = array<i64: 128, 256>}, {pipeline_mode = #tpu.pipeline_mode<synchronous>, transform_indices = @transform_3, window_bounds = array<i64: 1, 256>}, {pipeline_mode = #tpu.pipeline_mode<synchronous>, transform_indices = @transform_4, window_bounds = array<i64: 256, 4>}, {pipeline_mode = #tpu.pipeline_mode<synchronous>, transform_indices = @transform_5, window_bounds = array<i64: 1, 4>}, {pipeline_mode = #tpu.pipeline_mode<synchronous>, transform_indices = @transform_6, window_bounds = array<i64: 4, 128>}, {pipeline_mode = #tpu.pipeline_mode<synchronous>, transform_indices = @transform_7, window_bounds = array<i64: 128, 128>}, {pipeline_mode = #tpu.pipeline_mode<synchronous>, transform_indices = @transform_8, window_bounds = array<i64: 4, 128>}, {transform_indices = @transform_9, window_bounds = array<i64: 8, 128>}]} {
    %c0 = arith.constant 0 : index
    %c0_0 = arith.constant 0 : index
    %0 = vector.load %arg1[%c0, %c0_0] : memref<8x64xf32, #tpu.memory_space<vmem>>, vector<8x64xf32>
    %c0_1 = arith.constant 0 : index
    %c0_2 = arith.constant 0 : index
    %1 = vector.load %arg2[%c0_1, %c0_2] : memref<64x256xf32, #tpu.memory_space<vmem>>, vector<64x256xf32>
    %cst = arith.constant dense<0.000000e+00> : vector<8x256xf32>
    %2 = tpu.matmul %0, %1, %cst {dimension_numbers = #tpu.dot_dimension_numbers<[1], [0], [0], [1], [0, 0, 1, 1], [], []>} : vector<8x64xf32>, vector<64x256xf32>, vector<8x256xf32> -> vector<8x256xf32>
    %3 = vector.extract_strided_slice %2 {offsets = [0, 0], sizes = [8, 128], strides = [1, 1]} : vector<8x256xf32> to vector<8x128xf32>
    %4 = vector.extract_strided_slice %2 {offsets = [0, 128], sizes = [8, 128], strides = [1, 1]} : vector<8x256xf32> to vector<8x128xf32>
    %c0_3 = arith.constant 0 : index
    %c0_4 = arith.constant 0 : index
    %5 = vector.load %arg3[%c0_3, %c0_4] : memref<128x256xf32, #tpu.memory_space<vmem>>, vector<128x256xf32>
    %cst_5 = arith.constant dense<0.000000e+00> : vector<8x256xf32>
    %6 = tpu.matmul %3, %5, %cst_5 {dimension_numbers = #tpu.dot_dimension_numbers<[1], [0], [0], [1], [0, 0, 1, 1], [], []>} : vector<8x128xf32>, vector<128x256xf32>, vector<8x256xf32> -> vector<8x256xf32>
    %c0_6 = arith.constant 0 : index
    %c0_7 = arith.constant 0 : index
    %7 = vector.load %arg4[%c0_6, %c0_7] : memref<1x256xf32, #tpu.memory_space<vmem>>, vector<1x256xf32>
    %8 = vector.broadcast %7 : vector<1x256xf32> to vector<8x256xf32>
    %9 = arith.addf %6, %8 : vector<8x256xf32>
    %cst_8 = arith.constant 0.000000e+00 : f32
    %10 = vector.broadcast %cst_8 : f32 to vector<8x256xf32>
    %11 = arith.maximumf %9, %10 : vector<8x256xf32>
    %c0_9 = arith.constant 0 : index
    %c0_10 = arith.constant 0 : index
    %12 = vector.load %arg5[%c0_9, %c0_10] : memref<256x4xf32, #tpu.memory_space<vmem>>, vector<256x4xf32>
    %cst_11 = arith.constant dense<0.000000e+00> : vector<8x4xf32>
    %13 = tpu.matmul %11, %12, %cst_11 {dimension_numbers = #tpu.dot_dimension_numbers<[1], [0], [0], [1], [0, 0, 1, 1], [], []>} : vector<8x256xf32>, vector<256x4xf32>, vector<8x4xf32> -> vector<8x4xf32>
    %c0_12 = arith.constant 0 : index
    %c0_13 = arith.constant 0 : index
    %14 = vector.load %arg6[%c0_12, %c0_13] : memref<1x4xf32, #tpu.memory_space<vmem>>, vector<1x4xf32>
    %15 = vector.broadcast %14 : vector<1x4xf32> to vector<8x4xf32>
    %16 = arith.addf %13, %15 : vector<8x4xf32>
    %cst_14 = arith.constant dense<0xFF800000> : vector<8xf32>
    %17 = vector.multi_reduction <maximumf>, %16, %cst_14 [1] : vector<8x4xf32> to vector<8xf32>
    %18 = vector.shape_cast %17 : vector<8xf32> to vector<8x1xf32>
    %19 = vector.broadcast %18 : vector<8x1xf32> to vector<8x4xf32>
    %20 = arith.subf %16, %19 : vector<8x4xf32>
    %21 = math.exp %20 : vector<8x4xf32>
    %cst_15 = arith.constant dense<0.000000e+00> : vector<8xf32>
    %22 = vector.multi_reduction <add>, %21, %cst_15 [1] : vector<8x4xf32> to vector<8xf32>
    %23 = vector.shape_cast %22 : vector<8xf32> to vector<8x1xf32>
    %24 = tpu.reciprocal %23 {approx = true} : vector<8x1xf32> -> vector<8x1xf32>
    %25 = vector.broadcast %24 : vector<8x1xf32> to vector<8x4xf32>
    %26 = arith.mulf %21, %25 : vector<8x4xf32>
    %27 = tpu.iota {dimensions = array<i32: 1>} : vector<8x4xi32>
    %cst_16 = arith.constant 0.000000e+00 : f32
    %28 = vector.broadcast %cst_16 : f32 to vector<8x4xf32>
    %cst_17 = arith.constant dense<0xFF800000> : vector<8xf32>
    %29 = vector.multi_reduction <maximumf>, %26, %cst_17 [1] : vector<8x4xf32> to vector<8xf32>
    %30 = vector.shape_cast %29 : vector<8xf32> to vector<8x1xf32>
    %31 = vector.broadcast %30 : vector<8x1xf32> to vector<8x4xf32>
    %32 = arith.cmpf oeq, %26, %31 : vector<8x4xf32>
    %c4_i32 = arith.constant 4 : i32
    %33 = vector.broadcast %c4_i32 : i32 to vector<8x4xi32>
    %34 = arith.select %32, %27, %33 : vector<8x4xi1>, vector<8x4xi32>
    %cst_18 = arith.constant dense<2147483647> : vector<8xi32>
    %35 = vector.multi_reduction <minsi>, %34, %cst_18 [1] : vector<8x4xi32> to vector<8xi32>
    %36 = vector.shape_cast %35 : vector<8xi32> to vector<8x1xi32>
    %37 = vector.broadcast %36 : vector<8x1xi32> to vector<8x4xi32>
    %38 = arith.cmpi eq, %27, %37 : vector<8x4xi32>
    %cst_19 = arith.constant 0.000000e+00 : f32
    %39 = vector.broadcast %cst_19 : f32 to vector<8x4xf32>
    %40 = arith.select %38, %26, %39 : vector<8x4xi1>, vector<8x4xf32>
    %41 = arith.addf %28, %40 : vector<8x4xf32>
    %cst_20 = arith.constant -1.000000e+00 : f32
    %42 = vector.broadcast %cst_20 : f32 to vector<8x4xf32>
    %43 = arith.select %38, %42, %26 : vector<8x4xi1>, vector<8x4xf32>
    %cst_21 = arith.constant dense<0xFF800000> : vector<8xf32>
    %44 = vector.multi_reduction <maximumf>, %43, %cst_21 [1] : vector<8x4xf32> to vector<8xf32>
    %45 = vector.shape_cast %44 : vector<8xf32> to vector<8x1xf32>
    %46 = vector.broadcast %45 : vector<8x1xf32> to vector<8x4xf32>
    %47 = arith.cmpf oeq, %43, %46 : vector<8x4xf32>
    %c4_i32_22 = arith.constant 4 : i32
    %48 = vector.broadcast %c4_i32_22 : i32 to vector<8x4xi32>
    %49 = arith.select %47, %27, %48 : vector<8x4xi1>, vector<8x4xi32>
    %cst_23 = arith.constant dense<2147483647> : vector<8xi32>
    %50 = vector.multi_reduction <minsi>, %49, %cst_23 [1] : vector<8x4xi32> to vector<8xi32>
    %51 = vector.shape_cast %50 : vector<8xi32> to vector<8x1xi32>
    %52 = vector.broadcast %51 : vector<8x1xi32> to vector<8x4xi32>
    %53 = arith.cmpi eq, %27, %52 : vector<8x4xi32>
    %cst_24 = arith.constant 0.000000e+00 : f32
    %54 = vector.broadcast %cst_24 : f32 to vector<8x4xf32>
    %55 = arith.select %53, %26, %54 : vector<8x4xi1>, vector<8x4xf32>
    %56 = arith.addf %41, %55 : vector<8x4xf32>
    %cst_25 = arith.constant dense<0.000000e+00> : vector<8xf32>
    %57 = vector.multi_reduction <add>, %56, %cst_25 [1] : vector<8x4xf32> to vector<8xf32>
    %58 = vector.shape_cast %57 : vector<8xf32> to vector<8x1xf32>
    %59 = tpu.reciprocal %58 {approx = true} : vector<8x1xf32> -> vector<8x1xf32>
    %60 = vector.broadcast %59 : vector<8x1xf32> to vector<8x4xf32>
    %61 = arith.mulf %56, %60 : vector<8x4xf32>
    %c0_26 = arith.constant 0 : index
    %c0_27 = arith.constant 0 : index
    %62 = vector.load %arg7[%c0_26, %c0_27] : memref<4x128xf32, #tpu.memory_space<vmem>>, vector<4x128xf32>
    %cst_28 = arith.constant dense<0.000000e+00> : vector<8x128xf32>
    %63 = tpu.matmul %61, %62, %cst_28 {dimension_numbers = #tpu.dot_dimension_numbers<[1], [0], [0], [1], [0, 0, 1, 1], [], []>} : vector<8x4xf32>, vector<4x128xf32>, vector<8x128xf32> -> vector<8x128xf32>
    %64 = arith.mulf %63, %4 : vector<8x128xf32>
    %c0_29 = arith.constant 0 : index
    %c0_30 = arith.constant 0 : index
    %65 = vector.load %arg8[%c0_29, %c0_30] : memref<128x128xf32, #tpu.memory_space<vmem>>, vector<128x128xf32>
    %cst_31 = arith.constant dense<0.000000e+00> : vector<8x128xf32>
    %66 = tpu.matmul %64, %65, %cst_31 {dimension_numbers = #tpu.dot_dimension_numbers<[1], [0], [0], [1], [0, 0, 1, 1], [], []>} : vector<8x128xf32>, vector<128x128xf32>, vector<8x128xf32> -> vector<8x128xf32>
    %c0_32 = arith.constant 0 : index
    %c0_33 = arith.constant 0 : index
    %67 = vector.load %arg9[%c0_32, %c0_33] : memref<4x128xf32, #tpu.memory_space<vmem>>, vector<4x128xf32>
    %cst_34 = arith.constant dense<0.000000e+00> : vector<8x128xf32>
    %68 = tpu.matmul %61, %67, %cst_34 {dimension_numbers = #tpu.dot_dimension_numbers<[1], [0], [0], [1], [0, 0, 1, 1], [], []>} : vector<8x4xf32>, vector<4x128xf32>, vector<8x128xf32> -> vector<8x128xf32>
    %69 = arith.addf %66, %68 : vector<8x128xf32>
    %c0_35 = arith.constant 0 : index
    %c0_36 = arith.constant 0 : index
    %70 = vector.load %arg10[%c0_35, %c0_36] : memref<8x128xf32, #tpu.memory_space<vmem>>, vector<8x128xf32>
    tpu.vector_store %arg10[%c0_35, %c0_36], %69 {strides = array<i32>} : memref<8x128xf32, #tpu.memory_space<vmem>>, vector<8x128xf32>,
    return
  }
  func.func @transform_0(%arg0: i32) -> (i32, i32) {
    %c0_i32 = arith.constant 0 : i32
    %c0_i32_0 = arith.constant 0 : i32
    return %arg0, %c0_i32 : i32, i32
  }
  func.func @transform_1(%arg0: i32) -> (i32, i32) {
    %c0_i32 = arith.constant 0 : i32
    %c0_i32_0 = arith.constant 0 : i32
    %c0_i32_1 = arith.constant 0 : i32
    return %c0_i32, %c0_i32_0 : i32, i32
  }
  func.func @transform_2(%arg0: i32) -> (i32, i32) {
    %c0_i32 = arith.constant 0 : i32
    %c0_i32_0 = arith.constant 0 : i32
    %c0_i32_1 = arith.constant 0 : i32
    return %c0_i32, %c0_i32_0 : i32, i32
  }
  func.func @transform_3(%arg0: i32) -> (i32, i32) {
    %c0_i32 = arith.constant 0 : i32
    %c0_i32_0 = arith.constant 0 : i32
    %c0_i32_1 = arith.constant 0 : i32
    return %c0_i32, %c0_i32_0 : i32, i32
  }
  func.func @transform_4(%arg0: i32) -> (i32, i32) {
    %c0_i32 = arith.constant 0 : i32
    %c0_i32_0 = arith.constant 0 : i32
    %c0_i32_1 = arith.constant 0 : i32
    return %c0_i32, %c0_i32_0 : i32, i32
  }
  func.func @transform_5(%arg0: i32) -> (i32, i32) {
    %c0_i32 = arith.constant 0 : i32
    %c0_i32_0 = arith.constant 0 : i32
    %c0_i32_1 = arith.constant 0 : i32
    return %c0_i32, %c0_i32_0 : i32, i32
  }
  func.func @transform_6(%arg0: i32) -> (i32, i32) {
    %c0_i32 = arith.constant 0 : i32
    %c0_i32_0 = arith.constant 0 : i32
    %c0_i32_1 = arith.constant 0 : i32
    return %c0_i32, %c0_i32_0 : i32, i32
  }
  func.func @transform_7(%arg0: i32) -> (i32, i32) {
    %c0_i32 = arith.constant 0 : i32
    %c0_i32_0 = arith.constant 0 : i32
    %c0_i32_1 = arith.constant 0 : i32
    return %c0_i32, %c0_i32_0 : i32, i32
  }
  func.func @transform_8(%arg0: i32) -> (i32, i32) {
    %c0_i32 = arith.constant 0 : i32
    %c0_i32_0 = arith.constant 0 : i32
    %c0_i32_1 = arith.constant 0 : i32
    return %c0_i32, %c0_i32_0 : i32, i32
  }
  func.func @transform_9(%arg0: i32) -> (i32, i32) {
    %c0_i32 = arith.constant 0 : i32
    %c0_i32_0 = arith.constant 0 : i32
    return %arg0, %c0_i32 : i32, i32
  }
}

</mosaic_0001>

<bundles_post_ra>
// kernel: moe_forward.1
= control target key start
LH: loop header
LB: loop body
LE: loop exit
PB: predicated region body
PF: predicated region fallthrough
CT: control target
= control target key end

     0   :  { %s1304_s30 = smov 0   ;;  %s1658_s0 = inlined_call_operand.vmem [shape: f32[16,64], index: 0, kind: input, shape index: {}]   ;;  %s1659_s1 = inlined_call_operand.vmem [shape: f32[64,256], index: 1, kind: input, shape index: {}]   ;;  %s1660_s2 = inlined_call_operand.vmem [shape: f32[128,256], index: 2, kind: input, shape index: {}]   ;;  %s1661_s3 = inlined_call_operand.vmem [shape: f32[1,256], index: 3, kind: input, shape index: {}]   ;;  %s1662_s4 = inlined_call_operand.vmem [shape: f32[256,4], index: 4, kind: input, shape index: {}]   ;;  %s1663_s5 = inlined_call_operand.vmem [shape: f32[1,4], index: 5, kind: input, shape index: {}]   ;;  %s1664_s6 = inlined_call_operand.vmem [shape: f32[4,128], index: 6, kind: input, shape index: {}]   ;;  %s1665_s7 = inlined_call_operand.vmem [shape: f32[128,128], index: 7, kind: input, shape index: {}]   ;;  %s1666_s8 = inlined_call_operand.vmem [shape: f32[4,128], index: 8, kind: input, shape index: {}]   ;;  %s1667_s9 = inlined_call_operand.vmem [shape: f32[16,128], index: 9, kind: output, shape index: {}]  }
   0x1 LB: > { %s1005_s10 = sadd.s32 4294967295, %s1249_s30   ;;  %p1009_p0 = scmp.ge.s32.totalorder %s1249_s30, 1  ;;  %s1249_s30 = sphi %s1304_s30, %s19_s30  }
   0x2   : > { %p286_p1 = scmp.lt.s32.totalorder %s1249_s30, 3 }
   0x4   : > { %p287_p2 = pnand %p1009_p0, %p286_p1 }
   0x5   : > { %v330_v0 = vld [vmem:[%s1659_s1 + $0x8] sm:$0xff] (!%p287_p2)  ;;  %v332_v1 = vld [vmem:[%s1659_s1 + $0x18] sm:$0xff] (!%p287_p2)  ;;  %v329_v2 = vld [vmem:[%s1659_s1] sm:$0xff] (!%p287_p2)  ;;  %v1251_v7 = vmov (!%p287_p2), 0.0   ;;  %p320_p3 = scmp.lt.s32.totalorder (!%p287_p2), %s1005_s10, 1  ;;  %vm345_vm0 = vcmask (!%p287_p2), 523264  }
   0x6   : > { %290 = sbr.rel (%p287_p2) target bundleno = 2456 (0x998), region = 56  ;;  %v1121_v3 = vpack.c.bf16 (!%p287_p2), %v332_v1, %v330_v0  ;;  %v331_v4 = vld [vmem:[%s1659_s1 + $0x10] sm:$0xff] (!%p287_p2)  ;;  %v334_v5 = vld [vmem:[%s1659_s1 + $0x28] sm:$0xff] (!%p287_p2)  ;;  %v336_v6 = vld [vmem:[%s1659_s1 + $0x38] sm:$0xff] (!%p287_p2)  ;;  %413 = vmatprep.mubr.f32.mxu0 (!%p287_p2), %v1251_v7  ;;  %528 = vmatprep.mubr.f32.mxu1 (!%p287_p2), %v1251_v7  ;;  %vm646_vm1 = vcmask (!%p287_p2), 31744   ;;  %vm716_vm8 = vcmask (!%p287_p2), 1043456  }
   0x7   : > { %v1123_v8 = vpack.c.bf16 (!%p287_p2), %v331_v4, %v329_v2  ;;  %v1125_v9 = vpack.c.bf16 (!%p287_p2), %v336_v6, %v334_v5  ;;  %v333_v10 = vld [vmem:[%s1659_s1 + $0x20] sm:$0xff] (!%p287_p2)  ;;  %v335_v11 = vld [vmem:[%s1659_s1 + $0x30] sm:$0xff] (!%p287_p2)  ;;  %v338_v12 = vld [vmem:[%s1659_s1 + $0x48] sm:$0xff] (!%p287_p2)  ;;  %vm1252_vm9 = vmmov (!%p287_p2), 0  }
   0x8   : > { %1122 = vmatprep.subr.bf16.mxu0 (!%p287_p2), %v1121_v3  ;;  %v340_v13 = vld [vmem:[%s1659_s1 + $0x58] sm:$0xff] (!%p287_p2)  ;;  %v1127_v14 = vpack.c.bf16 (!%p287_p2), %v335_v11, %v333_v10  ;;  %v337_v15 = vld [vmem:[%s1659_s1 + $0x40] sm:$0xff] (!%p287_p2)  ;;  %v339_v16 = vld [vmem:[%s1659_s1 + $0x50] sm:$0xff] (!%p287_p2) }
   0x9   : > { %1124 = vmatpush1.bf16.msra.mxu0 (!%p287_p2), %v1123_v8  ;;  %v1129_v17 = vpack.c.bf16 (!%p287_p2), %v340_v13, %v338_v12  ;;  %v342_v18 = vld [vmem:[%s1659_s1 + $0x68] sm:$0xff] (!%p287_p2)  ;;  %v423_v20 = vld [vmem:[%s1660_s2 + $0x18] sm:$0xff] (!%p287_p2)  ;;  %v420_v23 = vld [vmem:[%s1660_s2] sm:$0xff] (!%p287_p2)  ;;  %v1131_v29 = vpack.c.bf16 (!%p287_p2), %v339_v16, %v337_v15 }
   0xa   : > { %1126 = vmatprep.subr.bf16.mxu0 (!%p287_p2), %v1125_v9  ;;  %v421_v19 = vld [vmem:[%s1660_s2 + $0x8] sm:$0xff] (!%p287_p2)  ;;  %v344_v21 = vld [vmem:[%s1659_s1 + $0x78] sm:$0xff] (!%p287_p2)  ;;  %v422_v24 = vld [vmem:[%s1660_s2 + $0x10] sm:$0xff] (!%p287_p2) }
   0xb   : > { %v1137_v22 = vpack.c.bf16 (!%p287_p2), %v423_v20, %v421_v19  ;;  %v1139_v25 = vpack.c.bf16 (!%p287_p2), %v422_v24, %v420_v23  ;;  %v425_v26 = vld [vmem:[%s1660_s2 + $0x28] sm:$0xff] (!%p287_p2)  ;;  %v427_v27 = vld [vmem:[%s1660_s2 + $0x38] sm:$0xff] (!%p287_p2)  ;;  %v424_v28 = vld [vmem:[%s1660_s2 + $0x20] sm:$0xff] (!%p287_p2)  ;;  %v1133_v34 = vpack.c.bf16 (!%p287_p2), %v344_v21, %v342_v18 }
   0xc   : > { %v1141_v30 = vpack.c.bf16 (!%p287_p2), %v427_v27, %v425_v26  ;;  %v426_v31 = vld [vmem:[%s1660_s2 + $0x30] sm:$0xff] (!%p287_p2)  ;;  %v429_v32 = vld [vmem:[%s1660_s2 + $0x48] sm:$0xff] (!%p287_p2)  ;;  %v431_v33 = vld [vmem:[%s1660_s2 + $0x58] sm:$0xff] (!%p287_p2) }
   0xd   : > { %s1669_s10 = smov (!%p320_p3, %s1005_s10), 1  ;;  %1128 = vmatpush1.bf16.msra.mxu0 %v1127_v14  ;;  %1138 = vmatprep.subr.bf16.mxu1 %v1137_v22  ;;  %v341_v35 = vld [vmem:[%s1659_s1 + $0x60] sm:$0xff]  ;;  %v343_v36 = vld [vmem:[%s1659_s1 + $0x70] sm:$0xff]  ;;  %v1143_v37 = vpack.c.bf16 %v426_v31, %v424_v28  ;;  %v1145_v38 = vpack.c.bf16 %v431_v33, %v429_v32  ;;  %v433_v41 = vld [vmem:[%s1660_s2 + $0x68] sm:$0xff] }
   0xe   : > { %1130 = vmatprep.subr.bf16.mxu0 %v1129_v17  ;;  %1140 = vmatpush1.bf16.msra.mxu1 %v1139_v25  ;;  %s1010_s25 = sshll.u32 %s1669_s10, 3  ;;  %v428_v39 = vld [vmem:[%s1660_s2 + $0x40] sm:$0xff]  ;;  %v430_v40 = vld [vmem:[%s1660_s2 + $0x50] sm:$0xff]  ;;  %v435_v42 = vld [vmem:[%s1660_s2 + $0x78] sm:$0xff]  ;;  %v1135_v43 = vpack.c.bf16 %v343_v36, %v341_v35 }
   0xf   : > { %1142 = vmatprep.subr.bf16.mxu1 %v1141_v30  ;;  %s323_s17 = scalar_lea.vmem %s1658_s0, %s1010_s25  ;;  %v1147_v44 = vpack.c.bf16 %v430_v40, %v428_v39  ;;  %v1149_v45 = vpack.c.bf16 %v435_v42, %v433_v41  ;;  %v432_v46 = vld [vmem:[%s1660_s2 + $0x60] sm:$0xff]  ;;  %v434_v47 = vld [vmem:[%s1660_s2 + $0x70] sm:$0xff]  ;;  %v437_v48 = vld [vmem:[%s1660_s2 + $0x88] sm:$0xff]  ;;  %s327_s16 = scalar_lea.vmem %s1667_s9, %s1010_s25 }
  0x10   : > { %v439_v49 = vld [vmem:[%s1660_s2 + $0x98] sm:$0xff]  ;;  %v328_v50 = vld [vmem:[%s323_s17] sm:$0xff]  ;;  %v1151_v51 = vpack.c.bf16 %v434_v47, %v432_v46  ;;  %v438_v54 = vld [vmem:[%s1660_s2 + $0x90] sm:$0xff] }
  0x11   : > { %1132 = vmatpush1.bf16.msra.mxu0 %v1131_v29  ;;  %v1153_v52 = vpack.c.bf16 %v439_v49, %v437_v48  ;;  %v436_v53 = vld [vmem:[%s1660_s2 + $0x80] sm:$0xff]  ;;  %v441_v55 = vld [vmem:[%s1660_s2 + $0xa8] sm:$0xff]  ;;  %v443_v56 = vld [vmem:[%s1660_s2 + $0xb8] sm:$0xff] }
  0x12   : > { %1134 = vmatprep.subr.bf16.mxu0 %v1133_v34  ;;  %1144 = vmatpush1.bf16.msra.mxu1 %v1143_v37  ;;  %v1155_v57 = vpack.c.bf16 %v438_v54, %v436_v53  ;;  %v1157_v58 = vpack.c.bf16 %v443_v56, %v441_v55  ;;  %v440_v59 = vld [vmem:[%s1660_s2 + $0xa0] sm:$0xff]  ;;  %v442_v60 = vld [vmem:[%s1660_s2 + $0xb0] sm:$0xff]  ;;  %v445_v61 = vld [vmem:[%s1660_s2 + $0xc8] sm:$0xff] }
  0x13   : > { %1146 = vmatprep.subr.bf16.mxu1 %v1145_v38  ;;  %v447_v62 = vld [vmem:[%s1660_s2 + $0xd8] sm:$0xff]  ;;  %v1159_v63 = vpack.c.bf16 %v442_v60, %v440_v59  ;;  %v444_v1 = vld [vmem:[%s1660_s2 + $0xc0] sm:$0xff]  ;;  %v446_v2 = vld [vmem:[%s1660_s2 + $0xd0] sm:$0xff] }
  0x14   : > { %v1161_v0 = vpack.c.bf16 %v447_v62, %v445_v61  ;;  %v449_v3 = vld [vmem:[%s1660_s2 + $0xe8] sm:$0xff]  ;;  %v451_v4 = vld [vmem:[%s1660_s2 + $0xf8] sm:$0xff]  ;;  %v1163_v5 = vpack.c.bf16 %v446_v2, %v444_v1  ;;  %v448_v8 = vld [vmem:[%s1660_s2 + $0xe0] sm:$0xff]  ;;  %v454_v61 = vlaneseq }
  0x15   : > { %1136 = vmatpush1.bf16.msra.mxu0 %v1135_v43  ;;  %v1165_v6 = vpack.c.bf16 %v451_v4, %v449_v3  ;;  %v450_v9 = vld [vmem:[%s1660_s2 + $0xf0] sm:$0xff]  ;;  %v553_v11 = vld [vmem:[%s1662_s4 + $0x80] sm:$0xff]  ;;  %v554_v12 = vld [vmem:[%s1662_s4 + $0x88] sm:$0xff] }
  0x16   : > { %1148 = vmatpush1.bf16.msra.mxu1 %v1147_v44  ;;  %v1167_v10 = vpack.c.bf16 %v450_v9, %v448_v8  ;;  %v537_v13 = vld [vmem:[%s1662_s4] sm:$0xff]  ;;  %v1169_v14 = vpack.c.bf16 %v554_v12, %v553_v11  ;;  %v538_v15 = vld [vmem:[%s1662_s4 + $0x8] sm:$0xff]  ;;  %v555_v16 = vld [vmem:[%s1662_s4 + $0x90] sm:$0xff]  ;;  %v455_v62 = vshrl.u32 %v454_v61, 7 }
  0x17   : > { %1150 = vmatprep.subr.bf16.mxu1 %v1149_v45  ;;  %v556_v17 = vld [vmem:[%s1662_s4 + $0x98] sm:$0xff]  ;;  %v1171_v18 = vpack.c.bf16 %v538_v15, %v537_v13  ;;  %v539_v20 = vld [vmem:[%s1662_s4 + $0x10] sm:$0xff]  ;;  %v557_v22 = vld [vmem:[%s1662_s4 + $0xa0] sm:$0xff] }
  0x18   : > { %1012 = vmatmul.mubr.msk.f32.vlgmr.msra.gmra.mrb[0].mxu0 %vm345_vm0, %v328_v50  ;;  %v1173_v19 = vpack.c.bf16 %v556_v17, %v555_v16  ;;  %v540_v21 = vld [vmem:[%s1662_s4 + $0x18] sm:$0xff]  ;;  %1170 = vmatprep.subr.bf16.mxu0 %v1169_v14  ;;  %v558_v23 = vld [vmem:[%s1662_s4 + $0xa8] sm:$0xff]  ;;  %v541_v26 = vld [vmem:[%s1662_s4 + $0x20] sm:$0xff]  ;;  %v460_v1 = vsub.s32 1, %v455_v62 }
  0x19   : > { %1172 = vmatpush3.bf16.msra.mxu0 %v1171_v18  ;;  %v1175_v24 = vpack.c.bf16 %v540_v21, %v539_v20  ;;  %v1177_v25 = vpack.c.bf16 %v558_v23, %v557_v22  ;;  %v542_v27 = vld [vmem:[%s1662_s4 + $0x28] sm:$0xff]  ;;  %v559_v28 = vld [vmem:[%s1662_s4 + $0xb0] sm:$0xff]  ;;  %v560_v29 = vld [vmem:[%s1662_s4 + $0xb8] sm:$0xff] }
  0x1a   : > { %1152 = vmatpush1.bf16.msra.mxu1 %v1151_v51  ;;  %1174 = vmatprep.subr.bf16.mxu0 %v1173_v19  ;;  %v1179_v30 = vpack.c.bf16 %v542_v27, %v541_v26  ;;  %v1181_v31 = vpack.c.bf16 %v560_v29, %v559_v28  ;;  %v543_v32 = vld [vmem:[%s1662_s4 + $0x30] sm:$0xff]  ;;  %v544_v33 = vld [vmem:[%s1662_s4 + $0x38] sm:$0xff]  ;;  %v561_v34 = vld [vmem:[%s1662_s4 + $0xc0] sm:$0xff]  ;;  %v659_v26 = vand.u32 127, %v454_v61 }
  0x1b   : > { %1154 = vmatprep.subr.bf16.mxu1 %v1153_v52  ;;  %v562_v35 = vld [vmem:[%s1662_s4 + $0xc8] sm:$0xff]  ;;  %v1183_v36 = vpack.c.bf16 %v544_v33, %v543_v32  ;;  %v545_v38 = vld [vmem:[%s1662_s4 + $0x40] sm:$0xff]  ;;  %v563_v40 = vld [vmem:[%s1662_s4 + $0xd0] sm:$0xff] }
  0x1c   : > { %v1185_v37 = vpack.c.bf16 %v562_v35, %v561_v34  ;;  %v546_v39 = vld [vmem:[%s1662_s4 + $0x48] sm:$0xff]  ;;  %v564_v41 = vld [vmem:[%s1662_s4 + $0xd8] sm:$0xff]  ;;  %v547_v44 = vld [vmem:[%s1662_s4 + $0x50] sm:$0xff] }
  0x1d   : > { %1176 = vmatpush3.bf16.msra.mxu0 %v1175_v24  ;;  %v1187_v42 = vpack.c.bf16 %v546_v39, %v545_v38  ;;  %v1189_v43 = vpack.c.bf16 %v564_v41, %v563_v40  ;;  %v548_v45 = vld [vmem:[%s1662_s4 + $0x58] sm:$0xff]  ;;  %v565_v46 = vld [vmem:[%s1662_s4 + $0xe0] sm:$0xff]  ;;  %v566_v47 = vld [vmem:[%s1662_s4 + $0xe8] sm:$0xff] }
  0x1e   : > { %1156 = vmatpush1.bf16.msra.mxu1 %v1155_v57  ;;  %1178 = vmatprep.subr.bf16.mxu0 %v1177_v25  ;;  %v1191_v48 = vpack.c.bf16 %v548_v45, %v547_v44  ;;  %v1193_v49 = vpack.c.bf16 %v566_v47, %v565_v46  ;;  %v549_v52 = vld [vmem:[%s1662_s4 + $0x60] sm:$0xff]  ;;  %v550_v53 = vld [vmem:[%s1662_s4 + $0x68] sm:$0xff]  ;;  %v567_v55 = vld [vmem:[%s1662_s4 + $0xf0] sm:$0xff] }
  0x1f   : > { %1158 = vmatprep.subr.bf16.mxu1 %v1157_v58  ;;  %v1195_v54 = vpack.c.bf16 %v550_v53, %v549_v52  ;;  %v568_v56 = vld [vmem:[%s1662_s4 + $0xf8] sm:$0xff]  ;;  %v551_v58 = vld [vmem:[%s1662_s4 + $0x70] sm:$0xff]  ;;  %v1013_v13 = vld [vmem:[%s1663_s5] ss:$0 sm:$0xff] }
  0x20   : > { %v1197_v57 = vpack.c.bf16 %v568_v56, %v567_v55  ;;  %v552_v59 = vld [vmem:[%s1662_s4 + $0x78] sm:$0xff] }
  0x21   : > { %1180 = vmatpush3.bf16.msra.mxu0 %v1179_v30  ;;  %v1199_v60 = vpack.c.bf16 %v552_v59, %v551_v58 }
  0x22   : > { %1160 = vmatpush1.bf16.msra.mxu1 %v1159_v63  ;;  %1182 = vmatprep.subr.bf16.mxu0 %v1181_v31  ;;  %v456_v63 = vsub.s32 0, %v455_v62  ;;  %v712_v62 = vld [vmem:[%s1664_s6] sm:$0xf] }
  0x23   : > { %1162 = vmatprep.subr.bf16.mxu1 %v1161_v0  ;;  %v452_v0 = vld [vmem:[%s1661_s3] sm:$0x3] }
  0x24   : > { %v457_v2 = vrot.slane %v452_v0, %v456_v63  ;;  %v461_v3 = vrot.slane %v452_v0, %v460_v1  ;;  %v791_v63 = vld [vmem:[%s1665_s7] sm:$0xff]  ;;  %v792_v0 = vld [vmem:[%s1665_s7 + $0x8] sm:$0xff]  ;;  %v793_v1 = vld [vmem:[%s1665_s7 + $0x10] sm:$0xff] }
  0x25   : > { %1184 = vmatpush3.bf16.msra.mxu0 %v1183_v36 }
  0x26   : > { %1164 = vmatpush1.bf16.msra.mxu1 %v1163_v5  ;;  %1186 = vmatprep.subr.bf16.mxu0 %v1185_v37 }
  0x27   : > { %1166 = vmatprep.subr.bf16.mxu1 %v1165_v6 }
  0x29   : > { %1188 = vmatpush3.bf16.msra.mxu0 %v1187_v42 }
  0x2a   : > { %1168 = vmatpush1.bf16.msra.mxu1 %v1167_v10  ;;  %1190 = vmatprep.subr.bf16.mxu0 %v1189_v43 }
  0x2d   : > { %1192 = vmatpush3.bf16.msra.mxu0 %v1191_v48 }
  0x2e   : > { %1194 = vmatprep.subr.bf16.mxu0 %v1193_v49 }
  0x31   : > { %1196 = vmatpush3.bf16.msra.mxu0 %v1195_v54 }
  0x32   : > { %1198 = vmatprep.subr.bf16.mxu0 %v1197_v57 }
  0x35   : > { %1200 = vmatpush3.bf16.msra.mxu0 %v1199_v60 }
  0x36   : > { %1076 = vmatprep.subr.mxu0 %v1251_v7 }
  0xeb   : > { %v415_v50 = vpop.f32.mrb[0].mxu0 }
  0xec   : > { %v1548_v51 = vpop.f32.mrb[1].mxu0  ;;  %529 = vmatmul.mubr.f32.vlgmr.msra.gmra.mrb[0].mxu1 %v415_v50 }
  0xed   : > { %1118 = vmatprep.mubr.msk.f32.mxu1 %vm1252_vm9, %v1251_v7 }
 0x1bf   : > { %v530_v4 = vpop.f32.mrb[0].mxu1 }
 0x1c0   : > { %v531_v5 = vadd.f32 %v530_v4, %v457_v2  ;;  %v532_v6 = vpop.f32.mrb[1].mxu1  ;;  %v1253_v2 = vmov 0.0|0.0   ;;  %v794_v4 = vld [vmem:[%s1665_s7 + $0x18] sm:$0xff] }
 0x1c1   : > { %v533_v8 = vadd.f32 %v532_v6, %v461_v3  ;;  %1201 = vmatprep.subr.bf16.mxu1 %v1253_v2  ;;  %v1202_v3 = vpack.c.bf16 %v792_v0, %v791_v63  ;;  %v795_v6 = vld [vmem:[%s1665_s7 + $0x20] sm:$0xff] }
 0x1c2   : > { %v535_v10 = vmax.f32 %v531_v5, 0.0  ;;  %v1205_v5 = vpack.c.bf16 %v794_v4, %v793_v1 }
 0x1c3   : > { %v536_v9 = vmax.f32 %v533_v8, 0.0  ;;  %1203 = vmatpush3.bf16.msra.mxu1 %v1202_v3  ;;  %v796_v8 = vld [vmem:[%s1665_s7 + $0x28] sm:$0xff] }
 0x1c4   : > { %1204 = vmatprep.subr.bf16.mxu1 %v1253_v2 }
 0x1c5   : > { %640 = vmatprep.mubr.f32.mxu0 %v536_v9  ;;  %v1208_v9 = vpack.c.bf16 %v796_v8, %v795_v6 }
 0x1c6   : > { %641 = vmatmul.mubr.f32.vlgmr.msra.gmra.mrb[2].mxu0 %v535_v10  ;;  %v797_v10 = vld [vmem:[%s1665_s7 + $0x30] sm:$0xff] }
 0x1c7   : > { %1077 = vmatpush3.msk.msra.mxu0 %vm716_vm8, %v712_v62  ;;  %1078 = vmatprep.mubr.msk.f32.mxu0 %vm1252_vm9, %v1251_v7 }
 0x1c8   : > { %1081 = vmatprep.subr.mxu0 %v1251_v7  ;;  %1206 = vmatpush3.bf16.msra.mxu1 %v1205_v5 }
 0x1c9   : > { %1207 = vmatprep.subr.bf16.mxu1 %v1253_v2 }
 0x1cc   : > { %1209 = vmatpush3.bf16.msra.mxu1 %v1208_v9 }
 0x1cd   : > { %1210 = vmatprep.subr.bf16.mxu1 %v1253_v2 }
 0x299   : > { %v1052_v11 = vpop.f32.mrb[2].mxu0 }
 0x29a   : > { %v1053_v12 = vpop.f32.mrb[3].mxu0 }
 0x29b   : > { %v1054_v14 = vadd.f32 %v1053_v12, %v1052_v11  ;;  %v798_v11 = vld [vmem:[%s1665_s7 + $0x38] sm:$0xff] }
 0x29c   : > { %v1211_v12 = vpack.c.bf16 %v798_v11, %v797_v10 }
 0x29d   : > { %v643_v15 = vadd.f32 %v1054_v14, %v1013_v13  ;;  %v799_v13 = vld [vmem:[%s1665_s7 + $0x40] sm:$0xff]  ;;  %v800_v14 = vld [vmem:[%s1665_s7 + $0x48] sm:$0xff] }
 0x29e   : > { %1212 = vmatpush3.bf16.msra.mxu1 %v1211_v12 }
 0x29f   : > { %v647_v16 = vsel %vm646_vm1, %v643_v15, -inf  ;;  %1213 = vmatprep.subr.bf16.mxu1 %v1253_v2 }
 0x2a0   : > { %648 = vmax.xlane.f32.xlu0 %v647_v16  ;;  %v801_v16 = vld [vmem:[%s1665_s7 + $0x50] sm:$0xff] }
 0x32d   : > { %v649_v17 = vpop.xlane.xlu0 %648 }
 0x32e   : > { %v650_v18 = vsub.f32 %v643_v15, %v649_v17  ;;  %v1214_v15 = vpack.c.bf16 %v800_v14, %v799_v13  ;;  %v802_v17 = vld [vmem:[%s1665_s7 + $0x58] sm:$0xff] }
 0x330   : > { %v651_v19 = vmul.f32 1.442695, %v650_v18  ;;  %1215 = vmatpush3.bf16.msra.mxu1 %v1214_v15  ;;  %v1217_v18 = vpack.c.bf16 %v802_v17, %v801_v16 }
 0x331   : > { %1216 = vmatprep.subr.bf16.mxu1 %v1253_v2 }
 0x332   : > { %1237 = vpow2.f32 %v651_v19  ;;  %v803_v19 = vld [vmem:[%s1665_s7 + $0x60] sm:$0xff] }
 0x334   : > { %1218 = vmatpush3.bf16.msra.mxu1 %v1217_v18 }
 0x335   : > { %1219 = vmatprep.subr.bf16.mxu1 %v1253_v2 }
 0x33c   : > { %v1238_v20 = vpop.eup %1237 }
 0x33d   : > { %v653_v21 = vsel %vm646_vm1, %v1238_v20, 0.0 }
 0x33e   : > { %654 = vadd.xlane.f32.xlu0 %v653_v21 }
 0x3cb   : > { %v655_v22 = vpop.xlane.xlu0 %654 }
 0x3cc   : > { %1239 = vrcp.f32 %v655_v22 }
 0x3d6   : > { %v1240_v23 = vpop.eup %1239 }
 0x3d7   : > { %v657_v24 = vmul.f32 %v1240_v23, %v1238_v20  ;;  %v804_v20 = vld [vmem:[%s1665_s7 + $0x68] sm:$0xff] }
 0x3d8   : > { %v1220_v21 = vpack.c.bf16 %v804_v20, %v803_v19 }
 0x3d9   : > { %v660_v25 = vsel %vm646_vm1, %v657_v24, -inf }
 0x3da   : > { %661 = vmax.xlane.f32.xlu1 %v660_v25  ;;  %1221 = vmatpush3.bf16.msra.mxu1 %v1220_v21  ;;  %v807_v25 = vld [vmem:[%s1666_s8] sm:$0xf] }
 0x3db   : > { %1222 = vmatprep.subr.bf16.mxu1 %v1253_v2 }
 0x467   : > { %v662_v27 = vpop.xlane.xlu1 %661 }
 0x468   : > { %vm663_vm2 = vcmp.eq.f32.partialorder %v657_v24, %v662_v27  ;;  %v806_v27 = vld [vmem:[%s1665_s7 + $0x78] sm:$0xff] }
 0x469   : > { %v664_v28 = vsel %vm663_vm2, %v659_v26, 4 }
 0x46a   : > { %v665_v29 = vsel %vm646_vm1, %v664_v28, 2147483647 }
 0x46b   : > { %v667_v30 = vshra.s32 %v665_v29, 16  ;;  %v666_v32 = vand.u32 65535, %v665_v29 }
 0x46d   : > { %v669_v31 = vcvt.s32.f32 %v667_v30  ;;  %v668_v34 = vcvt.s32.f32 %v666_v32 }
 0x46f   : > { %670 = vmin.xlane.f32.xlu1 %v669_v31 }
 0x4fc   : > { %v671_v33 = vpop.xlane.xlu1 %670 }
 0x4fd   : > { %vm672_vm3 = vcmp.eq.f32.partialorder %v669_v31, %v671_v33  ;;  %v677_v36 = vcvt.f32.s32 %v671_v33 }
 0x4fe   : > { %v673_v35 = vsel %vm672_vm3, %v668_v34, inf }
 0x4ff   : > { %674 = vmin.xlane.f32.xlu0 %v673_v35  ;;  %v678_v38 = vshll.u32 %v677_v36, 16 }
 0x58c   : > { %v675_v37 = vpop.xlane.xlu0 %674 }
 0x58d   : > { %v676_v39 = vcvt.f32.s32 %v675_v37 }
 0x58f   : > { %v679_v40 = vadd.s32 %v678_v38, %v676_v39 }
 0x591   : > { %vm680_vm4 = vcmp.eq.s32.totalorder %v659_v26, %v679_v40 }
 0x592   : > { %v683_v41 = vsel %vm680_vm4, -1.0, %v657_v24  ;;  %v681_v58 = vsel %vm680_vm4, %v657_v24, 0.0 }
 0x593   : > { %v684_v42 = vsel %vm646_vm1, %v683_v41, -inf }
 0x594   : > { %685 = vmax.xlane.f32.xlu1 %v684_v42 }
 0x621   : > { %v686_v43 = vpop.xlane.xlu1 %685 }
 0x622   : > { %vm687_vm5 = vcmp.eq.f32.partialorder %v683_v41, %v686_v43 }
 0x623   : > { %v688_v44 = vsel %vm687_vm5, %v659_v26, 4 }
 0x624   : > { %v689_v45 = vsel %vm646_vm1, %v688_v44, 2147483647 }
 0x625   : > { %v691_v46 = vshra.s32 %v689_v45, 16  ;;  %v690_v48 = vand.u32 65535, %v689_v45 }
 0x627   : > { %v693_v47 = vcvt.s32.f32 %v691_v46  ;;  %v692_v50 = vcvt.s32.f32 %v690_v48 }
 0x629   : > { %694 = vmin.xlane.f32.xlu0 %v693_v47 }
 0x6b6   : > { %v695_v49 = vpop.xlane.xlu0 %694 }
 0x6b7   : > { %vm696_vm6 = vcmp.eq.f32.partialorder %v693_v47, %v695_v49  ;;  %v701_v53 = vcvt.f32.s32 %v695_v49 }
 0x6b8   : > { %v697_v52 = vsel %vm696_vm6, %v692_v50, inf }
 0x6b9   : > { %698 = vmin.xlane.f32.xlu1 %v697_v52  ;;  %v702_v55 = vshll.u32 %v701_v53, 16 }
 0x746   : > { %v699_v54 = vpop.xlane.xlu1 %698 }
 0x747   : > { %v700_v56 = vcvt.f32.s32 %v699_v54 }
 0x749   : > { %v703_v57 = vadd.s32 %v702_v55, %v700_v56 }
 0x74b   : > { %vm704_vm7 = vcmp.eq.s32.totalorder %v659_v26, %v703_v57  ;;  %v805_v26 = vld [vmem:[%s1665_s7 + $0x70] sm:$0xff] }
 0x74c   : > { %v705_v59 = vsel %vm704_vm7, %v657_v24, 0.0  ;;  %v1223_v28 = vpack.c.bf16 %v806_v27, %v805_v26 }
 0x74d   : > { %v706_v60 = vadd.f32 %v705_v59, %v681_v58 }
 0x74e   : > { %1224 = vmatpush3.bf16.msra.mxu1 %v1223_v28 }
 0x74f   : > { %v707_v61 = vsel %vm646_vm1, %v706_v60, 0.0 }
 0x750   : > { %708 = vadd.xlane.f32.xlu0 %v707_v61 }
 0x7dd   : > { %v709_v22 = vpop.xlane.xlu0 %708 }
 0x7de   : > { %1241 = vrcp.f32 %v709_v22 }
 0x7e8   : > { %v1242_v23 = vpop.eup %1241 }
 0x7e9   : > { %v711_v24 = vmul.f32 %v1242_v23, %v706_v60 }
 0x7eb   : > { %1079 = vmatmul.mubr.msk.f32.vlgmr.msra.gmra.mrb[4].mxu0 %vm646_vm1, %v711_v24 }
 0x7ec   : > { %1082 = vmatpush3.msk.msra.mxu0 %vm716_vm8, %v807_v25  ;;  %1083 = vmatprep.mubr.msk.f32.mxu0 %vm1252_vm9, %v1251_v7 }
 0x7ef   : > { %1084 = vmatmul.mubr.msk.f32.vlgmr.msra.gmra.mrb[6].mxu0 %vm646_vm1, %v711_v24 }
 0x8be   : > { %v786_v29 = vpop.f32.mrb[4].mxu0 }
 0x8bf   : > { %v790_v30 = vmul.f32 %v786_v29, %v1548_v51  ;;  %v1080_v31 = vpop.f32.mrb[5].mxu0 }
 0x8c1   : > { %1119 = vmatmul.mubr.f32.vlgmr.msra.gmra.mrb[2].mxu1 %v790_v30 }
 0x8c2   : > { %v877_v32 = vpop.f32.mrb[6].mxu0 }
 0x8c3   : > { %v1085_v33 = vpop.f32.mrb[7].mxu0 }
 0x994   : > { %v947_v7 = vpop.f32.mrb[2].mxu1 }
 0x995   : > { %v948_v34 = vadd.f32 %v947_v7, %v877_v32  ;;  %v1120_v35 = vpop.f32.mrb[3].mxu1 }
 0x997   : > { %951 = vst [vmem:[%s327_s16] sm:$0xff] %v948_v34 }
 0x998 PF: > { %s19_s30 = sadd.s32 1, %s1249_s30  }
 0x999   : > { %p16_p4 = scmp.ge.s32.totalorder %s19_s30, 4  }
 0x99b   :  { %18 = sbr.rel (!%p16_p4) target bundleno = 1 (0x1), region = 86 }

</bundles_post_ra>
